<compile_context>
chip_gen: v5e
topology: v5e:2x2
jax: 0.10.0
libtpu: 0.0.40
codegen_flags: <defaults>
</compile_context>

<pallas_src>
import jax
import jax.numpy as jnp
from jax import lax
from jax.experimental import pallas as pl
from jax.experimental.pallas import tpu as pltpu


TB = 128  # batch rows per output block == one full lane tile


def upmf_kernel(uidx_ref, vidx_ref, u_row_ref, v_row_ref, out_ref):
    # u_row_ref / v_row_ref: (1, 1, K) gathered embedding rows for batch
    # element b = program_id(0) * TB + program_id(1) (gather done by the
    # BlockSpec index_maps using the scalar-prefetched indices).
    j = pl.program_id(1)

    @pl.when(j == 0)
    def _():
        out_ref[...] = jnp.zeros_like(out_ref)

    u = u_row_ref[0]            # (1, K)
    v = v_row_ref[0]            # (1, K)
    d = jnp.sum(u * v)          # scalar dot over the K embedding terms (VPU)

    # Deposit the scalar into lane j of the lane-dense (1, TB) output block,
    # which stays resident across the whole axis-1 sweep and is written back
    # to HBM once per batch block.
    lane = lax.broadcasted_iota(jnp.int32, out_ref.shape, 1)
    out_ref[...] = jnp.where(lane == j, d, out_ref[...])


def upmf_forward(user_index, item_index, Uemb, Vemb):
    """user_index/item_index: (B,) int.  Uemb: (U, K) f32.  Vemb: (I, K) f32."""
    B = user_index.shape[0]
    user_num, K = Uemb.shape
    item_num, _ = Vemb.shape

    num_blocks = pl.cdiv(B, TB)
    padded_B = num_blocks * TB

    # Clamp (avoid unchecked OOB gather DMA) and pad with row-0 gathers whose
    # results are discarded by the final slice.
    uidx = jnp.clip(user_index.astype(jnp.int32), 0, user_num - 1)
    vidx = jnp.clip(item_index.astype(jnp.int32), 0, item_num - 1)
    uidx = jnp.pad(uidx, (0, padded_B - B))
    vidx = jnp.pad(vidx, (0, padded_B - B))

    # (rows, K) -> (rows, 1, K): the gathered block's trailing (1, K) dims
    # equal the full trailing array dims, so the row blocks are layout-legal.
    Uemb3 = Uemb.reshape(user_num, 1, K)
    Vemb3 = Vemb.reshape(item_num, 1, K)

    def u_map(bi, j, uidx_ref, vidx_ref):
        return (uidx_ref[bi * TB + j], 0, 0)

    def v_map(bi, j, uidx_ref, vidx_ref):
        return (vidx_ref[bi * TB + j], 0, 0)

    def o_map(bi, j, uidx_ref, vidx_ref):
        return (bi, 0)

    grid_spec = pltpu.PrefetchScalarGridSpec(
        num_scalar_prefetch=2,
        grid=(num_blocks, TB),
        in_specs=[
            pl.BlockSpec((1, 1, K), u_map),   # one Uemb row per step
            pl.BlockSpec((1, 1, K), v_map),   # one Vemb row per step
        ],
        out_specs=pl.BlockSpec((1, TB), o_map),
    )

    out = pl.pallas_call(
        upmf_kernel,
        out_shape=jax.ShapeDtypeStruct((num_blocks, TB), jnp.float32),
        grid_spec=grid_spec,
        compiler_params=pltpu.CompilerParams(
            dimension_semantics=("parallel", "arbitrary")),
    )(uidx, vidx, Uemb3, Vemb3)

    return out.reshape(padded_B)[:B]  # (B,), matches PyTorch .sum(1)


if __name__ == "__main__":
    key = jax.random.PRNGKey(0)
    k1, k2, k3, k4 = jax.random.split(key, 4)

    user_num, item_num, embed_k = 16, 16, 4
    B = 8

    # nn.Embedding default init: N(0, 1)
    Uemb = jax.random.normal(k1, (user_num, embed_k), dtype=jnp.float32)
    Vemb = jax.random.normal(k2, (item_num, embed_k), dtype=jnp.float32)

    user_index = jax.random.randint(k3, (B,), 0, user_num, dtype=jnp.int32)
    item_index = jax.random.randint(k4, (B,), 0, item_num, dtype=jnp.int32)

    out = upmf_forward(user_index, item_index, Uemb, Vemb)
    out = jax.block_until_ready(out)

    # pure-JAX reference check
    ref = jnp.sum(Uemb[user_index] * Vemb[item_index], axis=1)
    assert out.shape == (B,)
    assert jnp.allclose(out, ref, atol=1e-5, rtol=1e-5)

    print("KERNEL_OK")
</pallas_src>

<mosaic_0001>
module attributes {stable_mosaic.version = 11 : i64} {
  func.func @upmf_kernel(%arg0: i32, %arg1: i32, %arg2: memref<128xi32, #tpu.memory_space<smem>>, %arg3: memref<128xi32, #tpu.memory_space<smem>>, %arg4: memref<1x1x4xf32, #tpu.memory_space<vmem>>, %arg5: memref<1x1x4xf32, #tpu.memory_space<vmem>>, %arg6: memref<1x128xf32, #tpu.memory_space<vmem>>) attributes {dimension_semantics = [#tpu.dimension_semantics<parallel>, #tpu.dimension_semantics<arbitrary>], iteration_bounds = array<i64: 1, 128>, scalar_prefetch = 2 : i64, scratch_operands = 0 : i64, tpu.core_type = #tpu.core_type<tc>, window_params = [{transform_indices = @transform_0, window_bounds = array<i64: 1, 1, 4>}, {transform_indices = @transform_1, window_bounds = array<i64: 1, 1, 4>}, {transform_indices = @transform_2, window_bounds = array<i64: 1, 128>}]} {
    %c0_i32 = arith.constant 0 : i32
    %0 = arith.cmpi eq, %arg1, %c0_i32 : i32
    %1 = arith.extui %0 : i1 to i32
    %c0_i32_0 = arith.constant 0 : i32
    %2 = arith.cmpi ne, %1, %c0_i32_0 : i32
    scf.if %2 {
      %cst_10 = arith.constant 0.000000e+00 : f32
      %19 = vector.broadcast %cst_10 : f32 to vector<1x128xf32>
      %c0_11 = arith.constant 0 : index
      %c0_12 = arith.constant 0 : index
      %20 = vector.load %arg6[%c0_11, %c0_12] : memref<1x128xf32, #tpu.memory_space<vmem>>, vector<1x128xf32>
      tpu.vector_store %arg6[%c0_11, %c0_12], %19 {strides = array<i32>} : memref<1x128xf32, #tpu.memory_space<vmem>>, vector<1x128xf32>,
    } else {
    }
    %c0 = arith.constant 0 : index
    %c0_1 = arith.constant 0 : index
    %c0_2 = arith.constant 0 : index
    %3 = vector.load %arg4[%c0, %c0_1, %c0_2] : memref<1x1x4xf32, #tpu.memory_space<vmem>>, vector<1x1x4xf32>
    %4 = vector.shape_cast %3 : vector<1x1x4xf32> to vector<1x4xf32>
    %c0_3 = arith.constant 0 : index
    %c0_4 = arith.constant 0 : index
    %c0_5 = arith.constant 0 : index
    %5 = vector.load %arg5[%c0_3, %c0_4, %c0_5] : memref<1x1x4xf32, #tpu.memory_space<vmem>>, vector<1x1x4xf32>
    %6 = vector.shape_cast %5 : vector<1x1x4xf32> to vector<1x4xf32>
    %7 = arith.mulf %4, %6 : vector<1x4xf32>
    %8 = vector.shape_cast %7 : vector<1x4xf32> to vector<1x1x4xf32>
    %cst = arith.constant dense<0.000000e+00> : vector<1xf32>
    %9 = vector.multi_reduction <add>, %8, %cst [1, 2] : vector<1x1x4xf32> to vector<1xf32>
    %10 = vector.shape_cast %9 : vector<1xf32> to vector<1x1x1xf32>
    %11 = vector.extract %10[0, 0, 0] : f32 from vector<1x1x1xf32>
    %12 = tpu.iota {dimensions = array<i32: 1>} : vector<1x128xi32>
    %13 = vector.broadcast %arg1 : i32 to vector<1x128xi32>
    %14 = arith.cmpi eq, %12, %13 : vector<1x128xi32>
    %c0_6 = arith.constant 0 : index
    %c0_7 = arith.constant 0 : index
    %15 = vector.load %arg6[%c0_6, %c0_7] : memref<1x128xf32, #tpu.memory_space<vmem>>, vector<1x128xf32>
    %16 = vector.broadcast %11 : f32 to vector<1x128xf32>
    %17 = arith.select %14, %16, %15 : vector<1x128xi1>, vector<1x128xf32>
    %c0_8 = arith.constant 0 : index
    %c0_9 = arith.constant 0 : index
    %18 = vector.load %arg6[%c0_8, %c0_9] : memref<1x128xf32, #tpu.memory_space<vmem>>, vector<1x128xf32>
    tpu.vector_store %arg6[%c0_8, %c0_9], %17 {strides = array<i32>} : memref<1x128xf32, #tpu.memory_space<vmem>>, vector<1x128xf32>,
    return
  }
  func.func @transform_0(%arg0: i32, %arg1: i32, %arg2: memref<128xi32, #tpu.memory_space<smem>>, %arg3: memref<128xi32, #tpu.memory_space<smem>>) -> (i32, i32, i32) {
    %c128_i32 = arith.constant 128 : i32
    %0 = arith.muli %arg0, %c128_i32 : i32
    %1 = arith.addi %0, %arg1 : i32
    %2 = arith.index_cast %1 : i32 to index
    %3 = memref.load %arg2[%2] : memref<128xi32, #tpu.memory_space<smem>>
    %c0_i32 = arith.constant 0 : i32
    %c0_i32_0 = arith.constant 0 : i32
    %c0_i32_1 = arith.constant 0 : i32
    return %3, %c0_i32, %c0_i32_0 : i32, i32, i32
  }
  func.func @transform_1(%arg0: i32, %arg1: i32, %arg2: memref<128xi32, #tpu.memory_space<smem>>, %arg3: memref<128xi32, #tpu.memory_space<smem>>) -> (i32, i32, i32) {
    %c128_i32 = arith.constant 128 : i32
    %0 = arith.muli %arg0, %c128_i32 : i32
    %1 = arith.addi %0, %arg1 : i32
    %2 = arith.index_cast %1 : i32 to index
    %3 = memref.load %arg3[%2] : memref<128xi32, #tpu.memory_space<smem>>
    %c0_i32 = arith.constant 0 : i32
    %c0_i32_0 = arith.constant 0 : i32
    %c0_i32_1 = arith.constant 0 : i32
    return %3, %c0_i32, %c0_i32_0 : i32, i32, i32
  }
  func.func @transform_2(%arg0: i32, %arg1: i32, %arg2: memref<128xi32, #tpu.memory_space<smem>>, %arg3: memref<128xi32, #tpu.memory_space<smem>>) -> (i32, i32) {
    %c0_i32 = arith.constant 0 : i32
    %c0_i32_0 = arith.constant 0 : i32
    return %arg0, %c0_i32 : i32, i32
  }
}

</mosaic_0001>

<bundles_post_ra>
// kernel: tpu_custom_call.1
= control target key start
LH: loop header
LB: loop body
LE: loop exit
PB: predicated region body
PF: predicated region fallthrough
CT: control target
= control target key end

     0   :  { %s431_s21 = smov [#allocation3]   ;;  %s432_s22 = smov [#allocation4]   ;;  %s511_s0 = inlined_call_operand.vmem [shape: s32[128], index: 0, kind: input, shape index: {}]   ;;  %s512_s2 = inlined_call_operand.vmem [shape: f32[16,1,4], index: 2, kind: input, shape index: {}]   ;;  %s513_s3 = inlined_call_operand.vmem [shape: f32[16,1,4], index: 3, kind: input, shape index: {}]   ;;  %s514_s4 = inlined_call_operand.hbm [shape: f32[1,128], index: 4, kind: output, shape index: {}]   ;;  %s515_s1 = inlined_call_operand.vmem [shape: s32[128], index: 1, kind: input, shape index: {}]  }
   0x1   :  { %s10_s17 = sshll.u32 %s511_s0, 4  ;;  %s15_s20 = sshll.u32 %s515_s1, 4  ;;  %s11_s17 = int_to_ptr.vmem [resolvable:$true] %s10_s17  ;;  %s16_s20 = int_to_ptr.vmem [resolvable:$true] %s15_s20 }
   0x2   :  { %13 = dma.vmem_to_smem %s11_s17, 16, %s431_s21, [#allocation2] }
   0x3   :  { %18 = dma.vmem_to_smem %s16_s20, 16, %s432_s22, [#allocation2] }
   0x4   :  { %413 = dma.done.wait [#allocation2], 32 }
   0x5   :  { %414 = vsyncadd [#allocation2], 4294967264 }
   0x6   :  { %21 = sfence }
   0x7   :  { %22 = vsyncpa [#allocation6], 0  ;;  %s466_s23 = smov 0   ;;  %s468_s24 = smov 0  }
   0x8   :  { %s470_s25 = smov 0  }
   0x9 LB: > { %s304_s0 = sadd.s32 4294967295, %s429_s25   ;;  %s37_s1 = sadd.s32 1, %s425_s24  ;;  %s429_s25 = sphi %s470_s25, %s28_s25   ;;  %s425_s24 = sphi %s468_s24, %s517_s24   ;;  %s421_s23 = sphi %s466_s23, %s516_s23  }
   0xa   : > { %p38_p0 = scmp.ge.s32.totalorder %s37_s1, 128  ;;  %p307_p1 = scmp.ge.s32.totalorder %s429_s25, 1 }
   0xb   : > { %p170_p2 = scmp.lt.s32.totalorder %s429_s25, 129 }
   0xc   : > { %s519_s1 = smov (%p38_p0, %s37_s1), 0 }
   0xd   : > { %p171_p3 = pnand %p307_p1, %p170_p2 }
   0xe   : > { %s196_s26 = sld [smem:[#allocation3 + %s421_s23]] (!%p171_p3)  ;;  %p308_p6 = scmp.ne.s32.totalorder (!%p171_p3), %s421_s23, 0 }
   0xf   : > { %174 = sbr.rel (%p171_p3) target bundleno = 216 (0xd8), region = 28  ;;  %s205_s27 = sld [smem:[#allocation4 + %s421_s23]] (!%p171_p3) }
  0x14   : > { %p197_p4 = scmp.lt.s32.totalorder %s196_s26, 15  ;;  %215 = sbr.rel (%p308_p6) target bundleno = 27 (0x1b), region = 32 }
  0x15   : > { %p206_p5 = scmp.lt.s32.totalorder %s205_s27, 15 }
  0x16   : > { %s521_s26 = smov (!%p197_p4, %s196_s26), 15 }
  0x17   : > { %s523_s27 = smov (!%p206_p5, %s205_s27), 15  ;;  %s199_s30 = scalar_lea.vmem %s512_s2, %s521_s26 }
  0x18   : > { %s208_s7 = scalar_lea.vmem %s513_s3, %s523_s27 }
  0x19   : > { %v433_v0 = vmov 0.0  }
  0x1a   : > { %216 = vst [vmem:[#allocation5] sm:$0x1] %v433_v0 }
  0x1b PF: > { %v217_v1 = vld [vmem:[%s199_s30] sm:$0x1]  ;;  %vm220_vm0 = vcmask 24576   ;;  %v231_v12 = vlaneseq  ;;  %v233_v14 = vstv %s421_s23  ;;  %s434_s8 = smov [#allocation5]   ;;  %s248_s12 = sshll.u32 %s514_s4, 4  ;;  %s249_s12 = int_to_ptr.hbm [resolvable:$true] %s248_s12 }
  0x1c   : > { %v218_v2 = vld [vmem:[%s208_s7] sm:$0x1]  ;;  %s246_s9 = sshll.u32 %s434_s8, 4  ;;  %p319_p7 = scmp.eq.s32.totalorder %s304_s0, 127  ;;  %s247_s9 = int_to_ptr.vmem [resolvable:$true] %s246_s9 }
  0x1d   : > { %v219_v3 = vmul.f32 %v218_v2, %v217_v1  ;;  %v232_v13 = vand.u32 127, %v231_v12 }
  0x1f   : > { %v221_v4 = vsel %vm220_vm0, %v219_v3, 0.0  ;;  %vm234_vm1 = vcmp.eq.s32.totalorder %v232_v13, %v233_v14 }
  0x20   : > { %222 = vadd.xlane.f32.xlu0 %v221_v4 }
  0x21   : > { %v235_v15 = vld [vmem:[#allocation5] sm:$0x1] }
  0x93   : > { %v223_v5 = vpop.xlane.xlu0 %222 }
  0x94   : > { %v224_v6 = vrot.slane %v223_v5, 4 }
  0x96   : > { %v225_v7 = vadd.f32 %v224_v6, %v223_v5 }
  0x98   : > { %v226_v8 = vrot.slane %v225_v7, 2 }
  0x9a   : > { %v227_v9 = vadd.f32 %v226_v8, %v225_v7 }
  0x9c   : > { %v228_v10 = vrot.slane %v227_v9, 1 }
  0x9e   : > { %v229_v11 = vadd.f32 %v228_v10, %v227_v9 }
  0xa0   : > { %313 = vpush %v229_v11 }
  0xd1   : > { %s314_s13 = spop %313 }
  0xd2   : > { %v236_v16 = vstv %s314_s13 }
  0xd3   : > { %v237_v17 = vsel %vm234_vm1, %v236_v16, %v235_v15 }
  0xd4   : > { %238 = vst [vmem:[#allocation5] sm:$0x1] %v237_v17 }
  0xd5   : > { %316 = dma.vmem_to_hbm [thread:$0]  (%p319_p7), %s247_s9, 16, %s249_s12, [#allocation6]  }
  0xd6   : > { %416 = dma.done.wait (%p319_p7), [#allocation6], 16  }
  0xd7   : > { %418 = vsyncadd (%p319_p7), [#allocation6], 4294967280 }
  0xd8 PF: > { %s28_s25 = sadd.s32 1, %s429_s25   ;;  %s516_s23 = smov %s425_s24 }
  0xd9   : > { %p25_p8 = scmp.ge.s32.totalorder %s28_s25, 130   ;;  %s517_s24 = smov %s519_s1 }
  0xdb   :  { %27 = sbr.rel (!%p25_p8) target bundleno = 9 (0x9), region = 63 }
  0xe0   :  { %262 = vsyncpa [#allocation6], 1 }
  0xe1   :  { %264 = vsyncpa [#allocation6 + $0x1], 1 }

</bundles_post_ra>
